<compile_context>
chip_gen: v7x
topology: tpu7x:2x2x1
jax: 0.10.0
libtpu: 0.0.40
codegen_flags: <defaults>
</compile_context>

<pallas_src>
import jax
import jax.numpy as jnp
from jax import lax
from jax.experimental import pallas as pl
from jax.experimental.pallas import tpu as pltpu

EMBED_DIM = 32
N_HEADS = 8


def _test_kernel(u_i_ref, u_il_ref, k_ref, m_ref, f_ref):
    u_i = u_i_ref[...]          # (1, D)
    u_il = u_il_ref[...]        # (1, D)

    # s = (u_i * u_il) / ||u_i|| / ||u_il||  -- rsqrt on the EUP, multiply on VPU.
    inv_norm = lax.rsqrt(jnp.sum(u_i * u_i)) * lax.rsqrt(jnp.sum(u_il * u_il))
    s = (u_i * u_il) * inv_norm                                  # (1, D)

    # logits[i] = K_i(s): broadcast-multiply + lane reduce (VPU + XLU, no MXU,
    # no transpose).  Layout is (N, 1): N on sublanes.
    logits = jnp.sum(s * k_ref[...], axis=-1, keepdims=True)     # (N, 1)

    # torch.softmax(alpha, dim=0) is a softmax over a size-1 axis -> exactly
    # 1.0 for finite logits (and NaN-propagating otherwise).  Kept faithfully;
    # it costs one exp over 8 values.
    mx = jnp.max(logits, axis=-1, keepdims=True)
    e = jnp.exp(logits - mx)
    alpha = e / jnp.sum(e, axis=-1, keepdims=True)               # (N, 1) == 1.0

    # V[i] = u_il * M[i]  (VPU multiply), f = alpha @ V as a sublane reduce.
    V = u_il * m_ref[...]                                        # (N, D)
    f_ref[...] = jnp.sum(alpha * V, axis=0, keepdims=True)       # (1, D)


def test_forward(u_i, u_il, k_mat, m_mat):
    """u_i, u_il: (1, D) f32; k_mat, m_mat: (N, D) f32 -> f: (1, D) f32."""
    _, d = k_mat.shape
    vmem = lambda: pl.BlockSpec(memory_space=pltpu.MemorySpace.VMEM)
    return pl.pallas_call(
        _test_kernel,
        out_shape=jax.ShapeDtypeStruct((1, d), jnp.float32),
        in_specs=[vmem(), vmem(), vmem(), vmem()],
        out_specs=vmem(),
    )(u_i, u_il, k_mat, m_mat)


def _reference(u_i, u_il, k_mat, m_mat):
    s = (u_i * u_il) / jnp.linalg.norm(u_i) / jnp.linalg.norm(u_il)
    logits = s @ k_mat.T                                  # (1, N)
    alpha = jax.nn.softmax(logits, axis=0)                # all ones
    V = u_il * m_mat                                      # (N, D)
    return alpha @ V                                      # (1, D)


if __name__ == "__main__":
    key = jax.random.PRNGKey(0)
    k_ui, k_uil, k_m, k_k = jax.random.split(key, 4)

    # Inputs (the module implies row vectors of size embed_dim).
    u_i = jax.random.normal(k_ui, (1, EMBED_DIM), dtype=jnp.float32)
    u_il = jax.random.normal(k_uil, (1, EMBED_DIM), dtype=jnp.float32)

    # Parameters, deterministic init:
    #   M[i] ~ Normal(0, 0.1)   (nn.init.normal_(std=0.1))
    #   K[i] = nn.Linear(D, 1, bias=False): weight ~ U(-1/sqrt(D), 1/sqrt(D))
    m_mat = 0.1 * jax.random.normal(k_m, (N_HEADS, EMBED_DIM), dtype=jnp.float32)
    bound = 1.0 / jnp.sqrt(jnp.float32(EMBED_DIM))
    k_mat = jax.random.uniform(k_k, (N_HEADS, EMBED_DIM), dtype=jnp.float32,
                               minval=-bound, maxval=bound)

    f = test_forward(u_i, u_il, k_mat, m_mat)
    jax.block_until_ready(f)

    f_ref = _reference(u_i, u_il, k_mat, m_mat)
    assert f.shape == (1, EMBED_DIM)
    assert jnp.allclose(f, f_ref, atol=1e-5, rtol=1e-4), "mismatch vs reference"

    print("KERNEL_OK")
</pallas_src>

<mosaic_0001>
module attributes {stable_mosaic.version = 11 : i64} {
  func.func @_test_kernel(%arg0: memref<1x32xf32, #tpu.memory_space<vmem>>, %arg1: memref<1x32xf32, #tpu.memory_space<vmem>>, %arg2: memref<8x32xf32, #tpu.memory_space<vmem>>, %arg3: memref<8x32xf32, #tpu.memory_space<vmem>>, %arg4: memref<1x32xf32, #tpu.memory_space<vmem>>) attributes {dimension_semantics = [], scalar_prefetch = 0 : i64, scratch_operands = 0 : i64, tpu.core_type = #tpu.core_type<tc>} {
    %c0 = arith.constant 0 : index
    %c0_0 = arith.constant 0 : index
    %0 = vector.load %arg0[%c0, %c0_0] : memref<1x32xf32, #tpu.memory_space<vmem>>, vector<1x32xf32>
    %c0_1 = arith.constant 0 : index
    %c0_2 = arith.constant 0 : index
    %1 = vector.load %arg1[%c0_1, %c0_2] : memref<1x32xf32, #tpu.memory_space<vmem>>, vector<1x32xf32>
    %2 = arith.mulf %0, %0 : vector<1x32xf32>
    %3 = vector.shape_cast %2 : vector<1x32xf32> to vector<1x1x32xf32>
    %cst = arith.constant dense<0.000000e+00> : vector<1xf32>
    %4 = vector.multi_reduction <add>, %3, %cst [1, 2] : vector<1x1x32xf32> to vector<1xf32>
    %5 = vector.shape_cast %4 : vector<1xf32> to vector<1x1x1xf32>
    %6 = vector.extract %5[0, 0, 0] : f32 from vector<1x1x1xf32>
    %7 = math.rsqrt %6 : f32
    %8 = arith.mulf %1, %1 : vector<1x32xf32>
    %9 = vector.shape_cast %8 : vector<1x32xf32> to vector<1x1x32xf32>
    %cst_3 = arith.constant dense<0.000000e+00> : vector<1xf32>
    %10 = vector.multi_reduction <add>, %9, %cst_3 [1, 2] : vector<1x1x32xf32> to vector<1xf32>
    %11 = vector.shape_cast %10 : vector<1xf32> to vector<1x1x1xf32>
    %12 = vector.extract %11[0, 0, 0] : f32 from vector<1x1x1xf32>
    %13 = math.rsqrt %12 : f32
    %14 = arith.mulf %7, %13 : f32
    %15 = arith.mulf %0, %1 : vector<1x32xf32>
    %16 = vector.broadcast %14 : f32 to vector<1x32xf32>
    %17 = arith.mulf %15, %16 : vector<1x32xf32>
    %c0_4 = arith.constant 0 : index
    %c0_5 = arith.constant 0 : index
    %18 = vector.load %arg2[%c0_4, %c0_5] : memref<8x32xf32, #tpu.memory_space<vmem>>, vector<8x32xf32>
    %19 = vector.broadcast %17 : vector<1x32xf32> to vector<8x32xf32>
    %20 = arith.mulf %19, %18 : vector<8x32xf32>
    %cst_6 = arith.constant dense<0.000000e+00> : vector<8xf32>
    %21 = vector.multi_reduction <add>, %20, %cst_6 [1] : vector<8x32xf32> to vector<8xf32>
    %22 = vector.shape_cast %21 : vector<8xf32> to vector<8x1xf32>
    %cst_7 = arith.constant dense<0xFF800000> : vector<8xf32>
    %23 = vector.multi_reduction <maximumf>, %22, %cst_7 [1] : vector<8x1xf32> to vector<8xf32>
    %24 = vector.shape_cast %23 : vector<8xf32> to vector<8x1xf32>
    %25 = arith.subf %22, %24 : vector<8x1xf32>
    %26 = math.exp %25 : vector<8x1xf32>
    %cst_8 = arith.constant dense<0.000000e+00> : vector<8xf32>
    %27 = vector.multi_reduction <add>, %26, %cst_8 [1] : vector<8x1xf32> to vector<8xf32>
    %28 = vector.shape_cast %27 : vector<8xf32> to vector<8x1xf32>
    %29 = arith.divf %26, %28 : vector<8x1xf32>
    %c0_9 = arith.constant 0 : index
    %c0_10 = arith.constant 0 : index
    %30 = vector.load %arg3[%c0_9, %c0_10] : memref<8x32xf32, #tpu.memory_space<vmem>>, vector<8x32xf32>
    %31 = vector.broadcast %1 : vector<1x32xf32> to vector<8x32xf32>
    %32 = arith.mulf %31, %30 : vector<8x32xf32>
    %33 = vector.broadcast %29 : vector<8x1xf32> to vector<8x32xf32>
    %34 = arith.mulf %33, %32 : vector<8x32xf32>
    %cst_11 = arith.constant dense<0.000000e+00> : vector<32xf32>
    %35 = vector.multi_reduction <add>, %34, %cst_11 [0] : vector<8x32xf32> to vector<32xf32>
    %36 = vector.shape_cast %35 : vector<32xf32> to vector<1x32xf32>
    %c0_12 = arith.constant 0 : index
    %c0_13 = arith.constant 0 : index
    %37 = vector.load %arg4[%c0_12, %c0_13] : memref<1x32xf32, #tpu.memory_space<vmem>>, vector<1x32xf32>
    tpu.vector_store %arg4[%c0_12, %c0_13], %36 {strides = array<i32>} : memref<1x32xf32, #tpu.memory_space<vmem>>, vector<1x32xf32>,
    return
  }
}

</mosaic_0001>

<bundles_post_ra>
// kernel: tpu_custom_call.1
= control target key start
LH: loop header
LB: loop body
LE: loop exit
PB: predicated region body
PF: predicated region fallthrough
CT: control target
= control target key end

     0   :  { %9 = vsyncpa [#allocation3], 0  ;;  %s294_s0 = inlined_call_operand.hbm [shape: f32[1,32], index: 0, kind: input, shape index: {}]   ;;  %s295_s1 = inlined_call_operand.vmem [shape: f32[1,32], index: 1, kind: input, shape index: {}]   ;;  %s296_s2 = inlined_call_operand.hbm [shape: f32[8,32], index: 2, kind: input, shape index: {}]   ;;  %s297_s3 = inlined_call_operand.vmem [shape: f32[8,32], index: 3, kind: input, shape index: {}]   ;;  %s298_s4 = inlined_call_operand.hbm [shape: f32[1,32], index: 4, kind: output, shape index: {}]  }
   0x1   :  { %10 = vsyncpa [#allocation6], 0 }
   0x2   :  { %11 = vsyncpa [#allocation4], 0  ;;  %s219_s15 = smov [#allocation2]   ;;  %s220_s17 = smov [#allocation5]  }
   0x3   :  { %s18_s16 = sshll.u32 %s219_s15, 4  ;;  %s30_s18 = sshll.u32 %s220_s17, 4  ;;  %s19_s16 = int_to_ptr.vmem [resolvable:$true] %s18_s16  ;;  %s31_s18 = int_to_ptr.vmem [resolvable:$true] %s30_s18 }
   0x4   :  { %s147_s21 = scalar_lea.hbm %s294_s0, 16 }
   0x5   :  { %p148_p0 = scmp.ne.s32.totalorder %s294_s0, %s147_s21  ;;  %p151_p1 = scmp.lt.u32.totalorder %s147_s21, %s294_s0 }
   0x7   :  { %p153_p2 = pnand %p151_p1, %p148_p0 }
   0x9   :  { %156 = shalt.err (!%p153_p2)
}
   0xa   :  { %s157_s26 = scalar_lea.vmem %s19_s16, 16  ;;  %s161_s27 = scalar_lea.vmem %s19_s16, 32 }
   0xb   :  { %p158_p3 = scmp.ne.s32.totalorder %s19_s16, %s157_s26  ;;  %p162_p4 = scmp.lt.s32.totalorder %s19_s16, %s19_s16 }
   0xc   :  { %p163_p5 = scmp.lt.s32.totalorder %s161_s27, %s157_s26 }
   0xe   :  { %p164_p6 = por %p163_p5, %p162_p4 }
  0x10   :  { %p165_p7 = pnand %p164_p6, %p158_p3 }
  0x12   :  { %168 = shalt.err (!%p165_p7)
}
  0x13   :  { %21 = dma.hbm_to_vmem [thread:$0]  %s294_s0, 16, %s19_s16, [#allocation3]  }
  0x14   :  { %s169_s6 = scalar_lea.hbm %s296_s2, 128 }
  0x15   :  { %p170_p8 = scmp.ne.s32.totalorder %s296_s2, %s169_s6  ;;  %p173_p9 = scmp.lt.u32.totalorder %s169_s6, %s296_s2 }
  0x17   :  { %p175_p10 = pnand %p173_p9, %p170_p8 }
  0x19   :  { %178 = shalt.err (!%p175_p10)
}
  0x1a   :  { %s179_s11 = scalar_lea.vmem %s31_s18, 128  ;;  %p184_p12 = scmp.lt.s32.totalorder %s31_s18, %s31_s18 }
  0x1b   :  { %p180_p11 = scmp.ne.s32.totalorder %s31_s18, %s179_s11  ;;  %p185_p13 = scmp.lt.s32.totalorder %s179_s11, %s179_s11 }
  0x1d   :  { %p186_p0 = por %p185_p13, %p184_p12 }
  0x1f   :  { %p187_p1 = pnand %p186_p0, %p180_p11 }
  0x21   :  { %190 = shalt.err (!%p187_p1)
}
  0x22   :  { %33 = dma.hbm_to_vmem [thread:$0]  %s296_s2, 128, %s31_s18, [#allocation6]  }
  0x23   :  { %213 = dma.done.wait [#allocation3], 16  }
  0x24   :  { %214 = vsyncadd [#allocation3], 4294967280 }
  0x25   :  { %215 = dma.done.wait [#allocation6], 128  }
  0x26   :  { %216 = vsyncadd [#allocation6], 4294967168  ;;  %v42_v0 = vld [vmem:[#allocation2] sm:$0x1]  ;;  %v43_v1 = vld [vmem:[%s295_s1] sm:$0x1]  ;;  %v79_v24 = vlaneseq }
  0x27   :  { %vm45_vm0 = vcmask 253952   ;;  %v44_v2 = vmul.f32 %v42_v0, %v42_v0  ;;  %v59_v3 = vmul.f32 %v43_v1, %v43_v1  ;;  %v74_v26 = vmul.f32 %v43_v1, %v42_v0  ;;  %v77_v30 = vld [vmem:[#allocation5] sm:$0xff]  ;;  %v95_v39 = vld [vmem:[%s297_s3] sm:$0xff]  ;;  %s221_s20 = smov [#allocation7]  }
  0x28   :  { %v80_v25 = vshrl.u32 %v79_v24, 7  ;;  %vm85_vm1 = vcmask 261120   ;;  %s118_s21 = sshll.u32 %s221_s20, 4  ;;  %s119_s21 = int_to_ptr.vmem [resolvable:$true] %s118_s21 }
  0x29   :  { %v46_v4 = vsel %vm45_vm0, %v44_v2, 0.0  ;;  %v60_v5 = vsel %vm45_vm0, %v59_v3, 0.0  ;;  %s191_s22 = scalar_lea.vmem %s119_s21, 16  ;;  %s195_s3 = scalar_lea.vmem %s119_s21, 32 }
  0x2a   :  { %47 = vadd.xlane.f32.xlu0 %v46_v4  ;;  %v81_v27 = vsub.s32 0, %v80_v25  ;;  %p192_p2 = scmp.ne.s32.totalorder %s119_s21, %s191_s22  ;;  %p196_p3 = scmp.lt.s32.totalorder %s119_s21, %s119_s21 }
  0x2b   :  { %p197_p4 = scmp.lt.s32.totalorder %s195_s3, %s191_s22 }
  0x2c   :  { %v100_v38 = vrot.slane %v43_v1, %v81_v27 }
  0x2d   :  { %p198_p5 = por %p197_p4, %p196_p3 }
  0x2e   :  { %61 = vadd.xlane.f32.xlu0 %v60_v5  ;;  %v102_v40 = vmul.f32 %v100_v38, %v95_v39 }
  0x2f   :  { %p199_p6 = pnand %p198_p5, %p192_p2 }
  0xb7   :  { %v48_v6 = vpop.xlane.xlu0 %47 }
  0xb8   :  { %v49_v7 = vrot.slane %v48_v6, 4 }
  0xba   :  { %v50_v8 = vadd.f32 %v49_v7, %v48_v6 }
  0xbb   :  { %v62_v13 = vpop.xlane.xlu0 %61 }
  0xbc   :  { %v51_v9 = vrot.slane %v50_v8, 2  ;;  %v63_v14 = vrot.slane %v62_v13, 4 }
  0xbe   :  { %v52_v10 = vadd.f32 %v51_v9, %v50_v8  ;;  %v64_v15 = vadd.f32 %v63_v14, %v62_v13 }
  0xc0   :  { %v53_v11 = vrot.slane %v52_v10, 1  ;;  %v65_v16 = vrot.slane %v64_v15, 2 }
  0xc2   :  { %v54_v12 = vadd.f32 %v53_v11, %v52_v10  ;;  %v66_v18 = vadd.f32 %v65_v16, %v64_v15 }
  0xc4   :  { %128 = vpush %v54_v12  ;;  %v67_v19 = vrot.slane %v66_v18, 1 }
  0xc6   :  { %v68_v21 = vadd.f32 %v67_v19, %v66_v18 }
  0xf5   :  { %s129_s1 = spop %128 }
  0xf6   :  { %v56_v17 = vstv %s129_s1 }
  0xf7   :  { %139 = vrsqrt.f32 %v56_v17 }
 0x101   :  { %v140_v20 = vpop.eup %139 }
 0x102   :  { %130 = vpush %v140_v20 }
 0x103   :  { %132 = vpush %v68_v21 }
 0x133   :  { %s131_s2 = spop %130 }
 0x134   :  { %s133_s15 = spop %132 }
 0x135   :  { %v70_v22 = vstv %s133_s15 }
 0x136   :  { %141 = vrsqrt.f32 %v70_v22 }
 0x140   :  { %v142_v23 = vpop.eup %141 }
 0x141   :  { %134 = vpush %v142_v23 }
 0x172   :  { %s135_s16 = spop %134 }
 0x173   :  { %s73_s17 = smul.f32 %s135_s16, %s131_s2 }
 0x175   :  { %v75_v28 = vstv %s73_s17 }
 0x176   :  { %v76_v29 = vmul.f32 %v75_v28, %v74_v26 }
 0x178   :  { %v82_v31 = vrot.slane %v76_v29, %v81_v27 }
 0x17a   :  { %v84_v32 = vmul.f32 %v82_v31, %v77_v30 }
 0x17c   :  { %v86_v33 = vsel %vm85_vm1, %v84_v32, 0.0 }
 0x17d   :  { %87 = vadd.xlane.f32.xlu1 %v86_v33 }
 0x20a   :  { %v88_v34 = vpop.xlane.xlu1 %87 }
 0x20b   :  { %v89_v35 = vsub.f32 %v88_v34, %v88_v34 }
 0x20d   :  { %v90_v36 = vmul.f32 1.442695, %v89_v35 }
 0x20f   :  { %143 = vpow2.f32 %v90_v36 }
 0x219   :  { %v144_v37 = vpop.eup %143 }
 0x21a   :  { %145 = vrcp.f32 %v144_v37 }
 0x224   :  { %v146_v41 = vpop.eup %145 }
 0x225   :  { %v94_v42 = vmul.f32 %v146_v41, %v144_v37 }
 0x227   :  { %v103_v43 = vmul.f32 %v102_v40, %v94_v42 }
 0x229   :  { %v104_v44 = vsel %vm85_vm1, %v103_v43, 0.0 }
 0x22a   :  { %v105_v45 = vrot.slane %v104_v44, 4 }
 0x22c   :  { %v106_v46 = vadd.f32 %v105_v45, %v104_v44 }
 0x22e   :  { %v107_v47 = vrot.slane %v106_v46, 2 }
 0x230   :  { %v108_v48 = vadd.f32 %v107_v47, %v106_v46 }
 0x232   :  { %v109_v49 = vrot.slane %v108_v48, 1 }
 0x234   :  { %v110_v50 = vadd.f32 %v109_v49, %v108_v48 }
 0x236   :  { %111 = vst.msk [vmem:[#allocation7] sm:$0x1] %vm45_vm0, %v110_v50 }
 0x237   :  { %202 = shalt.err (!%p199_p6)
}
 0x238   :  { %s203_s25 = scalar_lea.hbm %s298_s4, 16 }
 0x239   :  { %p204_p7 = scmp.ne.s32.totalorder %s298_s4, %s203_s25  ;;  %p207_p8 = scmp.lt.u32.totalorder %s203_s25, %s298_s4 }
 0x23b   :  { %p209_p9 = pnand %p207_p8, %p204_p7 }
 0x23d   :  { %212 = shalt.err (!%p209_p9)
}
 0x23e   :  { %121 = dma.vmem_to_hbm [thread:$0]  %s119_s21, 16, %s298_s4, [#allocation4]  }
 0x23f   :  { %217 = dma.done.wait [#allocation4], 16  }
 0x240   :  { %218 = vsyncadd [#allocation4], 4294967280 }
 0x241   :  { %125 = vsyncpa [#allocation3], 1 }
 0x242   :  { %126 = vsyncpa [#allocation6], 1 }
 0x243   :  { %127 = vsyncpa [#allocation4], 1 }

</bundles_post_ra>
